<compile_context>
chip_gen: v6e
topology: v6e:2x2x1
jax: 0.10.0
libtpu: 0.0.40
codegen_flags: <defaults>
</compile_context>

<pallas_src>
import functools

import jax
import jax.numpy as jnp
from jax.experimental import pallas as pl
from jax.experimental.pallas import tpu as pltpu


# --------------------------------------------------------------------------
# Pallas kernel: one invocation = full BiLSTM + final tanh/linear.
# --------------------------------------------------------------------------
def _bilstm_kernel(seq_ref, w_in_ref, b_in_ref, whh_ref, wout_ref, bout_ref,
                   logit_ref, zx_ref, *, T, B, H):
    H2 = 2 * H      # combined state width: [fwd | bwd]

    # ---- hoisted input projection: one MXU matmul for all T steps ----------
    # seq_ref: (T*B, 2D) = [x_t | x_{T-1-t}] ; w_in_ref: (2D, 8H) block-diag;
    # b_in_ref: (1, 8H) fused (b_ih + b_hh) for both directions.
    zx_ref[...] = (jnp.dot(seq_ref[...], w_in_ref[...],
                           preferred_element_type=jnp.float32)
                   + b_in_ref[...])

    whh = whh_ref[...]          # (2H, 8H) block-diagonal recurrent weights

    def step(t, carry):
        h, c = carry                                        # each (B, 2H)
        r = pl.multiple_of(t * B, B)
        z = (zx_ref[pl.ds(r, B), :]                         # (B, 8H)
             + jnp.dot(h, whh, preferred_element_type=jnp.float32))
        i_g = jax.nn.sigmoid(z[:, 0 * H2:1 * H2])           # [i_f | i_b]
        f_g = jax.nn.sigmoid(z[:, 1 * H2:2 * H2])           # [f_f | f_b]
        g_g = jnp.tanh(z[:, 2 * H2:3 * H2])                 # [g_f | g_b]
        o_g = jax.nn.sigmoid(z[:, 3 * H2:4 * H2])           # [o_f | o_b]
        c = f_g * c + i_g * g_g
        h = o_g * jnp.tanh(c)
        return h, c

    h0 = jnp.zeros((B, H2), jnp.float32)
    c0 = jnp.zeros((B, H2), jnp.float32)
    h, c = jax.lax.fori_loop(0, T, step, (h0, c0), unroll=True)

    # [h_fwd | h_bwd | c_fwd | c_bwd] == torch.cat(torch.cat((h_n, c_n),0),1)
    hidden = jnp.concatenate([h, c], axis=1)                # (B, 4H)
    act = jnp.tanh(hidden)
    logit_ref[...] = (jnp.dot(act, wout_ref[...],
                              preferred_element_type=jnp.float32)
                      + bout_ref[...]).astype(logit_ref.dtype)


# --------------------------------------------------------------------------
# Wrapper: embedding glue + weight packing + pallas_call.
# --------------------------------------------------------------------------
def _dir_blockdiag(wf_t, wb_t, H):
    """Pack (X,4H) fwd/bwd weights into a (2X, 8H) block-diagonal matrix with
    gate-major, direction-interleaved columns [i_f,i_b,f_f,f_b,g_f,g_b,o_f,o_b]."""
    X = wf_t.shape[0]
    blk = jnp.zeros((2, X, 4, 2, H), jnp.float32)
    blk = blk.at[0, :, :, 0, :].set(wf_t.reshape(X, 4, H))
    blk = blk.at[1, :, :, 1, :].set(wb_t.reshape(X, 4, H))
    return blk.reshape(2 * X, 8 * H)


def bilstm_lexicon_forward(x_tokens, params):
    """Forward pass of BiLSTM_1.

    x_tokens: int32 (L0, L1) token ids.  The module feeds the embedded tensor
    into a batch_first=False LSTM, so T = L0 and B = L1.  Returns (L1, C).
    """
    # ---- glue: embedding lookup + dropout(eval)=identity -------------------
    # TODO(synk): embedding gather stays in plain JAX (data-dependent row
    # gather; not worth a manual DMA gather at these sizes).
    emb = params["embed"][x_tokens].astype(jnp.float32)     # (T, B, D)
    T, B, D = emb.shape
    H = params["whh_f"].shape[1]                            # whh_f: (4H, H)
    C = params["w_out"].shape[0]                            # w_out: (C, 4H)

    # Pad the batch (sublane) dim to a multiple of 8 (full sublane tiles).
    B_pad = max(8, -(-B // 8) * 8)
    if B_pad != B:
        emb = jnp.pad(emb, ((0, 0), (0, B_pad - B), (0, 0)))

    # [x_t | x_{T-1-t}] so one block-diagonal input projection produces the
    # forward AND backward per-step gate pre-activations in a single matmul.
    seq_comb = jnp.concatenate([emb, emb[::-1]], axis=-1)   # (T, B, 2D)
    seq2d = seq_comb.reshape(T * B_pad, 2 * D)              # (T*B, 2D)

    w_in = _dir_blockdiag(params["wih_f"].T, params["wih_b"].T, H)    # (2D, 8H)
    whh_blk = _dir_blockdiag(params["whh_f"].T, params["whh_b"].T, H)  # (2H, 8H)

    b_f = (params["bih_f"] + params["bhh_f"]).reshape(4, H)
    b_b = (params["bih_b"] + params["bhh_b"]).reshape(4, H)
    b_in = jnp.stack([b_f, b_b], axis=1).reshape(1, 8 * H)            # (1, 8H)

    wout_t = params["w_out"].T                                        # (4H, C)
    bout = params["b_out"].reshape(1, C)

    kernel = functools.partial(_bilstm_kernel, T=T, B=B_pad, H=H)

    logits = pl.pallas_call(
        kernel,
        out_shape=jax.ShapeDtypeStruct((B_pad, C), jnp.float32),
        grid=(1,),
        in_specs=[
            pl.BlockSpec((T * B_pad, 2 * D), lambda i: (0, 0)),  # [x_t|x_rev_t]
            pl.BlockSpec((2 * D, 8 * H), lambda i: (0, 0)),      # input proj W
            pl.BlockSpec((1, 8 * H), lambda i: (0, 0)),          # fused biases
            pl.BlockSpec((2 * H, 8 * H), lambda i: (0, 0)),      # recurrent W
            pl.BlockSpec((4 * H, C), lambda i: (0, 0)),          # hidden2label W
            pl.BlockSpec((1, C), lambda i: (0, 0)),              # hidden2label b
        ],
        out_specs=pl.BlockSpec((B_pad, C), lambda i: (0, 0)),
        scratch_shapes=[pltpu.VMEM((T * B_pad, 8 * H), jnp.float32)],
        compiler_params=pltpu.CompilerParams(
            dimension_semantics=("arbitrary",)),
    )(seq2d, w_in, b_in, whh_blk, wout_t, bout)
    return logits[:B]


# --------------------------------------------------------------------------
# Pure-JAX reference (for verification).
# --------------------------------------------------------------------------
def _lstm_dir_ref(seq, wih, whh, bih, bhh, reverse):
    T, B, D = seq.shape
    H = whh.shape[1]

    def cell(carry, x_t):
        h, c = carry
        z = x_t @ wih.T + bih + h @ whh.T + bhh
        i = jax.nn.sigmoid(z[:, 0 * H:1 * H])
        f = jax.nn.sigmoid(z[:, 1 * H:2 * H])
        g = jnp.tanh(z[:, 2 * H:3 * H])
        o = jax.nn.sigmoid(z[:, 3 * H:4 * H])
        c = f * c + i * g
        h = o * jnp.tanh(c)
        return (h, c), None

    init = (jnp.zeros((B, H), jnp.float32), jnp.zeros((B, H), jnp.float32))
    xs = seq[::-1] if reverse else seq
    (h, c), _ = jax.lax.scan(cell, init, xs)
    return h, c


def bilstm_lexicon_reference(x_tokens, params):
    emb = params["embed"][x_tokens].astype(jnp.float32)
    h_f, c_f = _lstm_dir_ref(emb, params["wih_f"], params["whh_f"],
                             params["bih_f"], params["bhh_f"], reverse=False)
    h_b, c_b = _lstm_dir_ref(emb, params["wih_b"], params["whh_b"],
                             params["bih_b"], params["bhh_b"], reverse=True)
    hidden = jnp.concatenate([h_f, h_b, c_f, c_b], axis=1)
    return jnp.tanh(hidden) @ params["w_out"].T + params["b_out"]


# --------------------------------------------------------------------------
# Deterministic parameter construction (synthetic; shapes follow __init__).
# --------------------------------------------------------------------------
def make_params(key, V, D, H, C, padding_id):
    ks = jax.random.split(key, 12)
    u = lambda k, shape: jax.random.uniform(k, shape, jnp.float32, -0.1, 0.1)
    embed = u(ks[0], (V, D)).at[padding_id].set(0.0)   # padding_idx row = 0
    return {
        "embed": embed,
        # forward direction (weight_ih_l0 / weight_hh_l0 / biases)
        "wih_f": u(ks[1], (4 * H, D)),
        "whh_f": u(ks[2], (4 * H, H)),
        "bih_f": u(ks[3], (4 * H,)),
        "bhh_f": u(ks[4], (4 * H,)),
        # backward direction (…_l0_reverse)
        "wih_b": u(ks[5], (4 * H, D)),
        "whh_b": u(ks[6], (4 * H, H)),
        "bih_b": u(ks[7], (4 * H,)),
        "bhh_b": u(ks[8], (4 * H,)),
        # hidden2label: Linear(4H -> C)
        "w_out": u(ks[9], (C, 4 * H)),
        "b_out": u(ks[10], (C,)),
    }


if __name__ == "__main__":
    # args: embed_num=50, embed_dim=32, lstm_hidden_dim=32, lstm_num_layers=1,
    #       class_num=8, paddingId=0, dropout in eval mode (identity).
    V, D, H, C = 50, 32, 32, 8
    L0, L1 = 8, 4          # x: (L0, L1) token ids -> LSTM sees T=L0, B=L1

    key = jax.random.PRNGKey(0)
    pkey, xkey = jax.random.split(key)
    params = make_params(pkey, V, D, H, C, padding_id=0)
    x_tokens = jax.random.randint(xkey, (L0, L1), 0, V, dtype=jnp.int32)

    logits = bilstm_lexicon_forward(x_tokens, params)
    logits = jax.block_until_ready(logits)

    ref = jax.block_until_ready(bilstm_lexicon_reference(x_tokens, params))
    assert logits.shape == (L1, C), logits.shape
    assert jnp.allclose(logits, ref, atol=5e-5, rtol=5e-5), (
        float(jnp.max(jnp.abs(logits - ref))))

    print("KERNEL_OK")
</pallas_src>

<mosaic_0001>
module attributes {stable_mosaic.version = 11 : i64} {
  func.func @_bilstm_kernel(%arg0: i32, %arg1: memref<64x64xf32, #tpu.memory_space<vmem>>, %arg2: memref<64x256xf32, #tpu.memory_space<vmem>>, %arg3: memref<1x256xf32, #tpu.memory_space<vmem>>, %arg4: memref<64x256xf32, #tpu.memory_space<vmem>>, %arg5: memref<128x8xf32, #tpu.memory_space<vmem>>, %arg6: memref<1x8xf32, #tpu.memory_space<vmem>>, %arg7: memref<8x8xf32, #tpu.memory_space<vmem>>, %arg8: memref<64x256xf32, #tpu.memory_space<vmem>>) attributes {dimension_semantics = [#tpu.dimension_semantics<arbitrary>], iteration_bounds = array<i64: 1>, scalar_prefetch = 0 : i64, scratch_operands = 1 : i64, tpu.core_type = #tpu.core_type<tc>, window_params = [{pipeline_mode = #tpu.pipeline_mode<synchronous>, transform_indices = @transform_0, window_bounds = array<i64: 64, 64>}, {pipeline_mode = #tpu.pipeline_mode<synchronous>, transform_indices = @transform_1, window_bounds = array<i64: 64, 256>}, {pipeline_mode = #tpu.pipeline_mode<synchronous>, transform_indices = @transform_2, window_bounds = array<i64: 1, 256>}, {pipeline_mode = #tpu.pipeline_mode<synchronous>, transform_indices = @transform_3, window_bounds = array<i64: 64, 256>}, {pipeline_mode = #tpu.pipeline_mode<synchronous>, transform_indices = @transform_4, window_bounds = array<i64: 128, 8>}, {pipeline_mode = #tpu.pipeline_mode<synchronous>, transform_indices = @transform_5, window_bounds = array<i64: 1, 8>}, {pipeline_mode = #tpu.pipeline_mode<synchronous>, transform_indices = @transform_6, window_bounds = array<i64: 8, 8>}]} {
    %c0 = arith.constant 0 : index
    %c0_0 = arith.constant 0 : index
    %0 = vector.load %arg1[%c0, %c0_0] : memref<64x64xf32, #tpu.memory_space<vmem>>, vector<64x64xf32>
    %c0_1 = arith.constant 0 : index
    %c0_2 = arith.constant 0 : index
    %1 = vector.load %arg2[%c0_1, %c0_2] : memref<64x256xf32, #tpu.memory_space<vmem>>, vector<64x256xf32>
    %cst = arith.constant dense<0.000000e+00> : vector<64x256xf32>
    %2 = tpu.matmul %0, %1, %cst {dimension_numbers = #tpu.dot_dimension_numbers<[1], [0], [0], [1], [0, 0, 1, 1], [], []>} : vector<64x64xf32>, vector<64x256xf32>, vector<64x256xf32> -> vector<64x256xf32>
    %c0_3 = arith.constant 0 : index
    %c0_4 = arith.constant 0 : index
    %3 = vector.load %arg3[%c0_3, %c0_4] : memref<1x256xf32, #tpu.memory_space<vmem>>, vector<1x256xf32>
    %4 = vector.broadcast %3 : vector<1x256xf32> to vector<64x256xf32>
    %5 = arith.addf %2, %4 : vector<64x256xf32>
    %c0_5 = arith.constant 0 : index
    %c0_6 = arith.constant 0 : index
    %6 = vector.load %arg8[%c0_5, %c0_6] : memref<64x256xf32, #tpu.memory_space<vmem>>, vector<64x256xf32>
    tpu.vector_store %arg8[%c0_5, %c0_6], %5 {strides = array<i32>} : memref<64x256xf32, #tpu.memory_space<vmem>>, vector<64x256xf32>,
    %c0_7 = arith.constant 0 : index
    %c0_8 = arith.constant 0 : index
    %7 = vector.load %arg4[%c0_7, %c0_8] : memref<64x256xf32, #tpu.memory_space<vmem>>, vector<64x256xf32>
    %cst_9 = arith.constant 0.000000e+00 : f32
    %8 = vector.broadcast %cst_9 : f32 to vector<8x64xf32>
    %cst_10 = arith.constant 0.000000e+00 : f32
    %9 = vector.broadcast %cst_10 : f32 to vector<8x64xf32>
    %c0_i32 = arith.constant 0 : i32
    %c8_i32 = arith.constant 8 : i32
    %10 = arith.muli %c0_i32, %c8_i32 : i32
    %11 = tpu.assume_multiple %10, 8 : i32
    %12 = arith.index_cast %11 : i32 to index
    %c0_11 = arith.constant 0 : index
    %13 = vector.load %arg8[%12, %c0_11] : memref<64x256xf32, #tpu.memory_space<vmem>>, vector<8x256xf32>
    %cst_12 = arith.constant dense<0.000000e+00> : vector<8x256xf32>
    %14 = tpu.matmul %8, %7, %cst_12 {dimension_numbers = #tpu.dot_dimension_numbers<[1], [0], [0], [1], [0, 0, 1, 1], [], []>} : vector<8x64xf32>, vector<64x256xf32>, vector<8x256xf32> -> vector<8x256xf32>
    %15 = arith.addf %13, %14 : vector<8x256xf32>
    %16 = vector.extract_strided_slice %15 {offsets = [0, 0], sizes = [8, 64], strides = [1, 1]} : vector<8x256xf32> to vector<8x64xf32>
    %17 = arith.negf %16 : vector<8x64xf32>
    %18 = math.exp %17 : vector<8x64xf32>
    %cst_13 = arith.constant 1.000000e+00 : f32
    %19 = vector.broadcast %cst_13 : f32 to vector<8x64xf32>
    %20 = arith.addf %19, %18 : vector<8x64xf32>
    %21 = arith.divf %19, %20 : vector<8x64xf32>
    %22 = vector.extract_strided_slice %15 {offsets = [0, 64], sizes = [8, 64], strides = [1, 1]} : vector<8x256xf32> to vector<8x64xf32>
    %23 = arith.negf %22 : vector<8x64xf32>
    %24 = math.exp %23 : vector<8x64xf32>
    %cst_14 = arith.constant 1.000000e+00 : f32
    %25 = vector.broadcast %cst_14 : f32 to vector<8x64xf32>
    %26 = arith.addf %25, %24 : vector<8x64xf32>
    %27 = arith.divf %25, %26 : vector<8x64xf32>
    %28 = vector.extract_strided_slice %15 {offsets = [0, 128], sizes = [8, 64], strides = [1, 1]} : vector<8x256xf32> to vector<8x64xf32>
    %29 = math.tanh %28 : vector<8x64xf32>
    %30 = vector.extract_strided_slice %15 {offsets = [0, 192], sizes = [8, 64], strides = [1, 1]} : vector<8x256xf32> to vector<8x64xf32>
    %31 = arith.negf %30 : vector<8x64xf32>
    %32 = math.exp %31 : vector<8x64xf32>
    %cst_15 = arith.constant 1.000000e+00 : f32
    %33 = vector.broadcast %cst_15 : f32 to vector<8x64xf32>
    %34 = arith.addf %33, %32 : vector<8x64xf32>
    %35 = arith.divf %33, %34 : vector<8x64xf32>
    %36 = arith.mulf %27, %9 : vector<8x64xf32>
    %37 = arith.mulf %21, %29 : vector<8x64xf32>
    %38 = arith.addf %36, %37 : vector<8x64xf32>
    %39 = math.tanh %38 : vector<8x64xf32>
    %40 = arith.mulf %35, %39 : vector<8x64xf32>
    %c1_i32 = arith.constant 1 : i32
    %c8_i32_16 = arith.constant 8 : i32
    %41 = arith.muli %c1_i32, %c8_i32_16 : i32
    %42 = tpu.assume_multiple %41, 8 : i32
    %43 = arith.index_cast %42 : i32 to index
    %c0_17 = arith.constant 0 : index
    %44 = vector.load %arg8[%43, %c0_17] : memref<64x256xf32, #tpu.memory_space<vmem>>, vector<8x256xf32>
    %cst_18 = arith.constant dense<0.000000e+00> : vector<8x256xf32>
    %45 = tpu.matmul %40, %7, %cst_18 {dimension_numbers = #tpu.dot_dimension_numbers<[1], [0], [0], [1], [0, 0, 1, 1], [], []>} : vector<8x64xf32>, vector<64x256xf32>, vector<8x256xf32> -> vector<8x256xf32>
    %46 = arith.addf %44, %45 : vector<8x256xf32>
    %47 = vector.extract_strided_slice %46 {offsets = [0, 0], sizes = [8, 64], strides = [1, 1]} : vector<8x256xf32> to vector<8x64xf32>
    %48 = arith.negf %47 : vector<8x64xf32>
    %49 = math.exp %48 : vector<8x64xf32>
    %cst_19 = arith.constant 1.000000e+00 : f32
    %50 = vector.broadcast %cst_19 : f32 to vector<8x64xf32>
    %51 = arith.addf %50, %49 : vector<8x64xf32>
    %52 = arith.divf %50, %51 : vector<8x64xf32>
    %53 = vector.extract_strided_slice %46 {offsets = [0, 64], sizes = [8, 64], strides = [1, 1]} : vector<8x256xf32> to vector<8x64xf32>
    %54 = arith.negf %53 : vector<8x64xf32>
    %55 = math.exp %54 : vector<8x64xf32>
    %cst_20 = arith.constant 1.000000e+00 : f32
    %56 = vector.broadcast %cst_20 : f32 to vector<8x64xf32>
    %57 = arith.addf %56, %55 : vector<8x64xf32>
    %58 = arith.divf %56, %57 : vector<8x64xf32>
    %59 = vector.extract_strided_slice %46 {offsets = [0, 128], sizes = [8, 64], strides = [1, 1]} : vector<8x256xf32> to vector<8x64xf32>
    %60 = math.tanh %59 : vector<8x64xf32>
    %61 = vector.extract_strided_slice %46 {offsets = [0, 192], sizes = [8, 64], strides = [1, 1]} : vector<8x256xf32> to vector<8x64xf32>
    %62 = arith.negf %61 : vector<8x64xf32>
    %63 = math.exp %62 : vector<8x64xf32>
    %cst_21 = arith.constant 1.000000e+00 : f32
    %64 = vector.broadcast %cst_21 : f32 to vector<8x64xf32>
    %65 = arith.addf %64, %63 : vector<8x64xf32>
    %66 = arith.divf %64, %65 : vector<8x64xf32>
    %67 = arith.mulf %58, %38 : vector<8x64xf32>
    %68 = arith.mulf %52, %60 : vector<8x64xf32>
    %69 = arith.addf %67, %68 : vector<8x64xf32>
    %70 = math.tanh %69 : vector<8x64xf32>
    %71 = arith.mulf %66, %70 : vector<8x64xf32>
    %c2_i32 = arith.constant 2 : i32
    %c8_i32_22 = arith.constant 8 : i32
    %72 = arith.muli %c2_i32, %c8_i32_22 : i32
    %73 = tpu.assume_multiple %72, 8 : i32
    %74 = arith.index_cast %73 : i32 to index
    %c0_23 = arith.constant 0 : index
    %75 = vector.load %arg8[%74, %c0_23] : memref<64x256xf32, #tpu.memory_space<vmem>>, vector<8x256xf32>
    %cst_24 = arith.constant dense<0.000000e+00> : vector<8x256xf32>
    %76 = tpu.matmul %71, %7, %cst_24 {dimension_numbers = #tpu.dot_dimension_numbers<[1], [0], [0], [1], [0, 0, 1, 1], [], []>} : vector<8x64xf32>, vector<64x256xf32>, vector<8x256xf32> -> vector<8x256xf32>
    %77 = arith.addf %75, %76 : vector<8x256xf32>
    %78 = vector.extract_strided_slice %77 {offsets = [0, 0], sizes = [8, 64], strides = [1, 1]} : vector<8x256xf32> to vector<8x64xf32>
    %79 = arith.negf %78 : vector<8x64xf32>
    %80 = math.exp %79 : vector<8x64xf32>
    %cst_25 = arith.constant 1.000000e+00 : f32
    %81 = vector.broadcast %cst_25 : f32 to vector<8x64xf32>
    %82 = arith.addf %81, %80 : vector<8x64xf32>
    %83 = arith.divf %81, %82 : vector<8x64xf32>
    %84 = vector.extract_strided_slice %77 {offsets = [0, 64], sizes = [8, 64], strides = [1, 1]} : vector<8x256xf32> to vector<8x64xf32>
    %85 = arith.negf %84 : vector<8x64xf32>
    %86 = math.exp %85 : vector<8x64xf32>
    %cst_26 = arith.constant 1.000000e+00 : f32
    %87 = vector.broadcast %cst_26 : f32 to vector<8x64xf32>
    %88 = arith.addf %87, %86 : vector<8x64xf32>
    %89 = arith.divf %87, %88 : vector<8x64xf32>
    %90 = vector.extract_strided_slice %77 {offsets = [0, 128], sizes = [8, 64], strides = [1, 1]} : vector<8x256xf32> to vector<8x64xf32>
    %91 = math.tanh %90 : vector<8x64xf32>
    %92 = vector.extract_strided_slice %77 {offsets = [0, 192], sizes = [8, 64], strides = [1, 1]} : vector<8x256xf32> to vector<8x64xf32>
    %93 = arith.negf %92 : vector<8x64xf32>
    %94 = math.exp %93 : vector<8x64xf32>
    %cst_27 = arith.constant 1.000000e+00 : f32
    %95 = vector.broadcast %cst_27 : f32 to vector<8x64xf32>
    %96 = arith.addf %95, %94 : vector<8x64xf32>
    %97 = arith.divf %95, %96 : vector<8x64xf32>
    %98 = arith.mulf %89, %69 : vector<8x64xf32>
    %99 = arith.mulf %83, %91 : vector<8x64xf32>
    %100 = arith.addf %98, %99 : vector<8x64xf32>
    %101 = math.tanh %100 : vector<8x64xf32>
    %102 = arith.mulf %97, %101 : vector<8x64xf32>
    %c3_i32 = arith.constant 3 : i32
    %c8_i32_28 = arith.constant 8 : i32
    %103 = arith.muli %c3_i32, %c8_i32_28 : i32
    %104 = tpu.assume_multiple %103, 8 : i32
    %105 = arith.index_cast %104 : i32 to index
    %c0_29 = arith.constant 0 : index
    %106 = vector.load %arg8[%105, %c0_29] : memref<64x256xf32, #tpu.memory_space<vmem>>, vector<8x256xf32>
    %cst_30 = arith.constant dense<0.000000e+00> : vector<8x256xf32>
    %107 = tpu.matmul %102, %7, %cst_30 {dimension_numbers = #tpu.dot_dimension_numbers<[1], [0], [0], [1], [0, 0, 1, 1], [], []>} : vector<8x64xf32>, vector<64x256xf32>, vector<8x256xf32> -> vector<8x256xf32>
    %108 = arith.addf %106, %107 : vector<8x256xf32>
    %109 = vector.extract_strided_slice %108 {offsets = [0, 0], sizes = [8, 64], strides = [1, 1]} : vector<8x256xf32> to vector<8x64xf32>
    %110 = arith.negf %109 : vector<8x64xf32>
    %111 = math.exp %110 : vector<8x64xf32>
    %cst_31 = arith.constant 1.000000e+00 : f32
    %112 = vector.broadcast %cst_31 : f32 to vector<8x64xf32>
    %113 = arith.addf %112, %111 : vector<8x64xf32>
    %114 = arith.divf %112, %113 : vector<8x64xf32>
    %115 = vector.extract_strided_slice %108 {offsets = [0, 64], sizes = [8, 64], strides = [1, 1]} : vector<8x256xf32> to vector<8x64xf32>
    %116 = arith.negf %115 : vector<8x64xf32>
    %117 = math.exp %116 : vector<8x64xf32>
    %cst_32 = arith.constant 1.000000e+00 : f32
    %118 = vector.broadcast %cst_32 : f32 to vector<8x64xf32>
    %119 = arith.addf %118, %117 : vector<8x64xf32>
    %120 = arith.divf %118, %119 : vector<8x64xf32>
    %121 = vector.extract_strided_slice %108 {offsets = [0, 128], sizes = [8, 64], strides = [1, 1]} : vector<8x256xf32> to vector<8x64xf32>
    %122 = math.tanh %121 : vector<8x64xf32>
    %123 = vector.extract_strided_slice %108 {offsets = [0, 192], sizes = [8, 64], strides = [1, 1]} : vector<8x256xf32> to vector<8x64xf32>
    %124 = arith.negf %123 : vector<8x64xf32>
    %125 = math.exp %124 : vector<8x64xf32>
    %cst_33 = arith.constant 1.000000e+00 : f32
    %126 = vector.broadcast %cst_33 : f32 to vector<8x64xf32>
    %127 = arith.addf %126, %125 : vector<8x64xf32>
    %128 = arith.divf %126, %127 : vector<8x64xf32>
    %129 = arith.mulf %120, %100 : vector<8x64xf32>
    %130 = arith.mulf %114, %122 : vector<8x64xf32>
    %131 = arith.addf %129, %130 : vector<8x64xf32>
    %132 = math.tanh %131 : vector<8x64xf32>
    %133 = arith.mulf %128, %132 : vector<8x64xf32>
    %c4_i32 = arith.constant 4 : i32
    %c8_i32_34 = arith.constant 8 : i32
    %134 = arith.muli %c4_i32, %c8_i32_34 : i32
    %135 = tpu.assume_multiple %134, 8 : i32
    %136 = arith.index_cast %135 : i32 to index
    %c0_35 = arith.constant 0 : index
    %137 = vector.load %arg8[%136, %c0_35] : memref<64x256xf32, #tpu.memory_space<vmem>>, vector<8x256xf32>
    %cst_36 = arith.constant dense<0.000000e+00> : vector<8x256xf32>
    %138 = tpu.matmul %133, %7, %cst_36 {dimension_numbers = #tpu.dot_dimension_numbers<[1], [0], [0], [1], [0, 0, 1, 1], [], []>} : vector<8x64xf32>, vector<64x256xf32>, vector<8x256xf32> -> vector<8x256xf32>
    %139 = arith.addf %137, %138 : vector<8x256xf32>
    %140 = vector.extract_strided_slice %139 {offsets = [0, 0], sizes = [8, 64], strides = [1, 1]} : vector<8x256xf32> to vector<8x64xf32>
    %141 = arith.negf %140 : vector<8x64xf32>
    %142 = math.exp %141 : vector<8x64xf32>
    %cst_37 = arith.constant 1.000000e+00 : f32
    %143 = vector.broadcast %cst_37 : f32 to vector<8x64xf32>
    %144 = arith.addf %143, %142 : vector<8x64xf32>
    %145 = arith.divf %143, %144 : vector<8x64xf32>
    %146 = vector.extract_strided_slice %139 {offsets = [0, 64], sizes = [8, 64], strides = [1, 1]} : vector<8x256xf32> to vector<8x64xf32>
    %147 = arith.negf %146 : vector<8x64xf32>
    %148 = math.exp %147 : vector<8x64xf32>
    %cst_38 = arith.constant 1.000000e+00 : f32
    %149 = vector.broadcast %cst_38 : f32 to vector<8x64xf32>
    %150 = arith.addf %149, %148 : vector<8x64xf32>
    %151 = arith.divf %149, %150 : vector<8x64xf32>
    %152 = vector.extract_strided_slice %139 {offsets = [0, 128], sizes = [8, 64], strides = [1, 1]} : vector<8x256xf32> to vector<8x64xf32>
    %153 = math.tanh %152 : vector<8x64xf32>
    %154 = vector.extract_strided_slice %139 {offsets = [0, 192], sizes = [8, 64], strides = [1, 1]} : vector<8x256xf32> to vector<8x64xf32>
    %155 = arith.negf %154 : vector<8x64xf32>
    %156 = math.exp %155 : vector<8x64xf32>
    %cst_39 = arith.constant 1.000000e+00 : f32
    %157 = vector.broadcast %cst_39 : f32 to vector<8x64xf32>
    %158 = arith.addf %157, %156 : vector<8x64xf32>
    %159 = arith.divf %157, %158 : vector<8x64xf32>
    %160 = arith.mulf %151, %131 : vector<8x64xf32>
    %161 = arith.mulf %145, %153 : vector<8x64xf32>
    %162 = arith.addf %160, %161 : vector<8x64xf32>
    %163 = math.tanh %162 : vector<8x64xf32>
    %164 = arith.mulf %159, %163 : vector<8x64xf32>
    %c5_i32 = arith.constant 5 : i32
    %c8_i32_40 = arith.constant 8 : i32
    %165 = arith.muli %c5_i32, %c8_i32_40 : i32
    %166 = tpu.assume_multiple %165, 8 : i32
    %167 = arith.index_cast %166 : i32 to index
    %c0_41 = arith.constant 0 : index
    %168 = vector.load %arg8[%167, %c0_41] : memref<64x256xf32, #tpu.memory_space<vmem>>, vector<8x256xf32>
    %cst_42 = arith.constant dense<0.000000e+00> : vector<8x256xf32>
    %169 = tpu.matmul %164, %7, %cst_42 {dimension_numbers = #tpu.dot_dimension_numbers<[1], [0], [0], [1], [0, 0, 1, 1], [], []>} : vector<8x64xf32>, vector<64x256xf32>, vector<8x256xf32> -> vector<8x256xf32>
    %170 = arith.addf %168, %169 : vector<8x256xf32>
    %171 = vector.extract_strided_slice %170 {offsets = [0, 0], sizes = [8, 64], strides = [1, 1]} : vector<8x256xf32> to vector<8x64xf32>
    %172 = arith.negf %171 : vector<8x64xf32>
    %173 = math.exp %172 : vector<8x64xf32>
    %cst_43 = arith.constant 1.000000e+00 : f32
    %174 = vector.broadcast %cst_43 : f32 to vector<8x64xf32>
    %175 = arith.addf %174, %173 : vector<8x64xf32>
    %176 = arith.divf %174, %175 : vector<8x64xf32>
    %177 = vector.extract_strided_slice %170 {offsets = [0, 64], sizes = [8, 64], strides = [1, 1]} : vector<8x256xf32> to vector<8x64xf32>
    %178 = arith.negf %177 : vector<8x64xf32>
    %179 = math.exp %178 : vector<8x64xf32>
    %cst_44 = arith.constant 1.000000e+00 : f32
    %180 = vector.broadcast %cst_44 : f32 to vector<8x64xf32>
    %181 = arith.addf %180, %179 : vector<8x64xf32>
    %182 = arith.divf %180, %181 : vector<8x64xf32>
    %183 = vector.extract_strided_slice %170 {offsets = [0, 128], sizes = [8, 64], strides = [1, 1]} : vector<8x256xf32> to vector<8x64xf32>
    %184 = math.tanh %183 : vector<8x64xf32>
    %185 = vector.extract_strided_slice %170 {offsets = [0, 192], sizes = [8, 64], strides = [1, 1]} : vector<8x256xf32> to vector<8x64xf32>
    %186 = arith.negf %185 : vector<8x64xf32>
    %187 = math.exp %186 : vector<8x64xf32>
    %cst_45 = arith.constant 1.000000e+00 : f32
    %188 = vector.broadcast %cst_45 : f32 to vector<8x64xf32>
    %189 = arith.addf %188, %187 : vector<8x64xf32>
    %190 = arith.divf %188, %189 : vector<8x64xf32>
    %191 = arith.mulf %182, %162 : vector<8x64xf32>
    %192 = arith.mulf %176, %184 : vector<8x64xf32>
    %193 = arith.addf %191, %192 : vector<8x64xf32>
    %194 = math.tanh %193 : vector<8x64xf32>
    %195 = arith.mulf %190, %194 : vector<8x64xf32>
    %c6_i32 = arith.constant 6 : i32
    %c8_i32_46 = arith.constant 8 : i32
    %196 = arith.muli %c6_i32, %c8_i32_46 : i32
    %197 = tpu.assume_multiple %196, 8 : i32
    %198 = arith.index_cast %197 : i32 to index
    %c0_47 = arith.constant 0 : index
    %199 = vector.load %arg8[%198, %c0_47] : memref<64x256xf32, #tpu.memory_space<vmem>>, vector<8x256xf32>
    %cst_48 = arith.constant dense<0.000000e+00> : vector<8x256xf32>
    %200 = tpu.matmul %195, %7, %cst_48 {dimension_numbers = #tpu.dot_dimension_numbers<[1], [0], [0], [1], [0, 0, 1, 1], [], []>} : vector<8x64xf32>, vector<64x256xf32>, vector<8x256xf32> -> vector<8x256xf32>
    %201 = arith.addf %199, %200 : vector<8x256xf32>
    %202 = vector.extract_strided_slice %201 {offsets = [0, 0], sizes = [8, 64], strides = [1, 1]} : vector<8x256xf32> to vector<8x64xf32>
    %203 = arith.negf %202 : vector<8x64xf32>
    %204 = math.exp %203 : vector<8x64xf32>
    %cst_49 = arith.constant 1.000000e+00 : f32
    %205 = vector.broadcast %cst_49 : f32 to vector<8x64xf32>
    %206 = arith.addf %205, %204 : vector<8x64xf32>
    %207 = arith.divf %205, %206 : vector<8x64xf32>
    %208 = vector.extract_strided_slice %201 {offsets = [0, 64], sizes = [8, 64], strides = [1, 1]} : vector<8x256xf32> to vector<8x64xf32>
    %209 = arith.negf %208 : vector<8x64xf32>
    %210 = math.exp %209 : vector<8x64xf32>
    %cst_50 = arith.constant 1.000000e+00 : f32
    %211 = vector.broadcast %cst_50 : f32 to vector<8x64xf32>
    %212 = arith.addf %211, %210 : vector<8x64xf32>
    %213 = arith.divf %211, %212 : vector<8x64xf32>
    %214 = vector.extract_strided_slice %201 {offsets = [0, 128], sizes = [8, 64], strides = [1, 1]} : vector<8x256xf32> to vector<8x64xf32>
    %215 = math.tanh %214 : vector<8x64xf32>
    %216 = vector.extract_strided_slice %201 {offsets = [0, 192], sizes = [8, 64], strides = [1, 1]} : vector<8x256xf32> to vector<8x64xf32>
    %217 = arith.negf %216 : vector<8x64xf32>
    %218 = math.exp %217 : vector<8x64xf32>
    %cst_51 = arith.constant 1.000000e+00 : f32
    %219 = vector.broadcast %cst_51 : f32 to vector<8x64xf32>
    %220 = arith.addf %219, %218 : vector<8x64xf32>
    %221 = arith.divf %219, %220 : vector<8x64xf32>
    %222 = arith.mulf %213, %193 : vector<8x64xf32>
    %223 = arith.mulf %207, %215 : vector<8x64xf32>
    %224 = arith.addf %222, %223 : vector<8x64xf32>
    %225 = math.tanh %224 : vector<8x64xf32>
    %226 = arith.mulf %221, %225 : vector<8x64xf32>
    %c7_i32 = arith.constant 7 : i32
    %c8_i32_52 = arith.constant 8 : i32
    %227 = arith.muli %c7_i32, %c8_i32_52 : i32
    %228 = tpu.assume_multiple %227, 8 : i32
    %229 = arith.index_cast %228 : i32 to index
    %c0_53 = arith.constant 0 : index
    %230 = vector.load %arg8[%229, %c0_53] : memref<64x256xf32, #tpu.memory_space<vmem>>, vector<8x256xf32>
    %cst_54 = arith.constant dense<0.000000e+00> : vector<8x256xf32>
    %231 = tpu.matmul %226, %7, %cst_54 {dimension_numbers = #tpu.dot_dimension_numbers<[1], [0], [0], [1], [0, 0, 1, 1], [], []>} : vector<8x64xf32>, vector<64x256xf32>, vector<8x256xf32> -> vector<8x256xf32>
    %232 = arith.addf %230, %231 : vector<8x256xf32>
    %233 = vector.extract_strided_slice %232 {offsets = [0, 0], sizes = [8, 64], strides = [1, 1]} : vector<8x256xf32> to vector<8x64xf32>
    %234 = arith.negf %233 : vector<8x64xf32>
    %235 = math.exp %234 : vector<8x64xf32>
    %cst_55 = arith.constant 1.000000e+00 : f32
    %236 = vector.broadcast %cst_55 : f32 to vector<8x64xf32>
    %237 = arith.addf %236, %235 : vector<8x64xf32>
    %238 = arith.divf %236, %237 : vector<8x64xf32>
    %239 = vector.extract_strided_slice %232 {offsets = [0, 64], sizes = [8, 64], strides = [1, 1]} : vector<8x256xf32> to vector<8x64xf32>
    %240 = arith.negf %239 : vector<8x64xf32>
    %241 = math.exp %240 : vector<8x64xf32>
    %cst_56 = arith.constant 1.000000e+00 : f32
    %242 = vector.broadcast %cst_56 : f32 to vector<8x64xf32>
    %243 = arith.addf %242, %241 : vector<8x64xf32>
    %244 = arith.divf %242, %243 : vector<8x64xf32>
    %245 = vector.extract_strided_slice %232 {offsets = [0, 128], sizes = [8, 64], strides = [1, 1]} : vector<8x256xf32> to vector<8x64xf32>
    %246 = math.tanh %245 : vector<8x64xf32>
    %247 = vector.extract_strided_slice %232 {offsets = [0, 192], sizes = [8, 64], strides = [1, 1]} : vector<8x256xf32> to vector<8x64xf32>
    %248 = arith.negf %247 : vector<8x64xf32>
    %249 = math.exp %248 : vector<8x64xf32>
    %cst_57 = arith.constant 1.000000e+00 : f32
    %250 = vector.broadcast %cst_57 : f32 to vector<8x64xf32>
    %251 = arith.addf %250, %249 : vector<8x64xf32>
    %252 = arith.divf %250, %251 : vector<8x64xf32>
    %253 = arith.mulf %244, %224 : vector<8x64xf32>
    %254 = arith.mulf %238, %246 : vector<8x64xf32>
    %255 = arith.addf %253, %254 : vector<8x64xf32>
    %256 = math.tanh %255 : vector<8x64xf32>
    %257 = arith.mulf %252, %256 : vector<8x64xf32>
    %c8_i32_58 = arith.constant 8 : i32
    %258 = tpu.concatenate %257, %255 in 1 : vector<8x64xf32>, vector<8x64xf32> -> vector<8x128xf32>
    %259 = math.tanh %258 : vector<8x128xf32>
    %c0_59 = arith.constant 0 : index
    %c0_60 = arith.constant 0 : index
    %260 = vector.load %arg5[%c0_59, %c0_60] : memref<128x8xf32, #tpu.memory_space<vmem>>, vector<128x8xf32>
    %cst_61 = arith.constant dense<0.000000e+00> : vector<8x8xf32>
    %261 = tpu.matmul %259, %260, %cst_61 {dimension_numbers = #tpu.dot_dimension_numbers<[1], [0], [0], [1], [0, 0, 1, 1], [], []>} : vector<8x128xf32>, vector<128x8xf32>, vector<8x8xf32> -> vector<8x8xf32>
    %c0_62 = arith.constant 0 : index
    %c0_63 = arith.constant 0 : index
    %262 = vector.load %arg6[%c0_62, %c0_63] : memref<1x8xf32, #tpu.memory_space<vmem>>, vector<1x8xf32>
    %263 = vector.broadcast %262 : vector<1x8xf32> to vector<8x8xf32>
    %264 = arith.addf %261, %263 : vector<8x8xf32>
    %c0_64 = arith.constant 0 : index
    %c0_65 = arith.constant 0 : index
    %265 = vector.load %arg7[%c0_64, %c0_65] : memref<8x8xf32, #tpu.memory_space<vmem>>, vector<8x8xf32>
    tpu.vector_store %arg7[%c0_64, %c0_65], %264 {strides = array<i32>} : memref<8x8xf32, #tpu.memory_space<vmem>>, vector<8x8xf32>,
    return
  }
  func.func @transform_0(%arg0: i32) -> (i32, i32) {
    %c0_i32 = arith.constant 0 : i32
    %c0_i32_0 = arith.constant 0 : i32
    %c0_i32_1 = arith.constant 0 : i32
    return %c0_i32, %c0_i32_0 : i32, i32
  }
  func.func @transform_1(%arg0: i32) -> (i32, i32) {
    %c0_i32 = arith.constant 0 : i32
    %c0_i32_0 = arith.constant 0 : i32
    %c0_i32_1 = arith.constant 0 : i32
    return %c0_i32, %c0_i32_0 : i32, i32
  }
  func.func @transform_2(%arg0: i32) -> (i32, i32) {
    %c0_i32 = arith.constant 0 : i32
    %c0_i32_0 = arith.constant 0 : i32
    %c0_i32_1 = arith.constant 0 : i32
    return %c0_i32, %c0_i32_0 : i32, i32
  }
  func.func @transform_3(%arg0: i32) -> (i32, i32) {
    %c0_i32 = arith.constant 0 : i32
    %c0_i32_0 = arith.constant 0 : i32
    %c0_i32_1 = arith.constant 0 : i32
    return %c0_i32, %c0_i32_0 : i32, i32
  }
  func.func @transform_4(%arg0: i32) -> (i32, i32) {
    %c0_i32 = arith.constant 0 : i32
    %c0_i32_0 = arith.constant 0 : i32
    %c0_i32_1 = arith.constant 0 : i32
    return %c0_i32, %c0_i32_0 : i32, i32
  }
  func.func @transform_5(%arg0: i32) -> (i32, i32) {
    %c0_i32 = arith.constant 0 : i32
    %c0_i32_0 = arith.constant 0 : i32
    %c0_i32_1 = arith.constant 0 : i32
    return %c0_i32, %c0_i32_0 : i32, i32
  }
  func.func @transform_6(%arg0: i32) -> (i32, i32) {
    %c0_i32 = arith.constant 0 : i32
    %c0_i32_0 = arith.constant 0 : i32
    %c0_i32_1 = arith.constant 0 : i32
    return %c0_i32, %c0_i32_0 : i32, i32
  }
}

</mosaic_0001>

<bundles_post_ra>
// kernel: tpu_custom_call.1
= control target key start
LH: loop header
LB: loop body
LE: loop exit
PB: predicated region body
PF: predicated region fallthrough
CT: control target
= control target key end

     0   :  { %11 = vsyncpa [#allocation4], 0  ;;  %s1920_s0 = inlined_call_operand.hbm [shape: f32[64,64], index: 0, kind: input, shape index: {}]   ;;  %s1921_s1 = inlined_call_operand.vmem [shape: f32[64,256], index: 1, kind: input, shape index: {}]   ;;  %s1922_s2 = inlined_call_operand.vmem [shape: f32[1,256], index: 2, kind: input, shape index: {}]   ;;  %s1923_s3 = inlined_call_operand.hbm [shape: f32[64,256], index: 3, kind: input, shape index: {}]   ;;  %s1924_s4 = inlined_call_operand.vmem [shape: f32[128,8], index: 4, kind: input, shape index: {}]   ;;  %s1925_s5 = inlined_call_operand.vmem [shape: f32[1,8], index: 5, kind: input, shape index: {}]   ;;  %s1926_s6 = inlined_call_operand.hbm [shape: f32[8,8], index: 6, kind: output, shape index: {}]  }
   0x1   :  { %12 = vsyncpa [#allocation7], 0 }
   0x2   :  { %13 = vsyncpa [#allocation5], 0  ;;  %s1494_s21 = smov [#allocation3]  }
   0x3   :  { %s19_s22 = sshll.u32 %s1494_s21, 4  ;;  %s20_s22 = int_to_ptr.vmem [resolvable:$true] %s19_s22 }
   0x4   :  { %s1436_s23 = scalar_lea.vmem %s20_s22, 1024  ;;  %p1441_p1 = scmp.lt.s32.totalorder %s20_s22, %s20_s22 }
   0x5   :  { %p1437_p0 = scmp.ne.s32.totalorder %s20_s22, %s1436_s23  ;;  %p1442_p2 = scmp.lt.s32.totalorder %s1436_s23, %s1436_s23 }
   0x7   :  { %p1443_p3 = por %p1442_p2, %p1441_p1 }
   0x9   :  { %p1444_p4 = pnand %p1443_p3, %p1437_p0 }
   0xb   :  { %1447 = shalt.err (!%p1444_p4)
}
   0xc   :  { %s1495_s24 = smov 128   ;;  %s1496_s25 = smov 8  }
   0xd   :  { %25 = dma.hbm_to_vmem [thread:$0]  %s1920_s0, 1024, %s20_s22, [#allocation4], %s1495_s24, %s1495_s24, %s1496_s25  }
   0xe   :  { %s1497_s28 = smov [#allocation6]  }
   0xf   :  { %s35_s29 = sshll.u32 %s1497_s28, 4  ;;  %s36_s29 = int_to_ptr.vmem [resolvable:$true] %s35_s29 }
  0x10   :  { %s1456_s30 = scalar_lea.vmem %s36_s29, 2048  ;;  %p1461_p6 = scmp.lt.s32.totalorder %s36_s29, %s36_s29 }
  0x11   :  { %p1457_p5 = scmp.ne.s32.totalorder %s36_s29, %s1456_s30  ;;  %p1462_p7 = scmp.lt.s32.totalorder %s1456_s30, %s1456_s30 }
  0x13   :  { %p1463_p8 = por %p1462_p7, %p1461_p6 }
  0x15   :  { %p1464_p9 = pnand %p1463_p8, %p1457_p5 }
  0x17   :  { %1467 = shalt.err (!%p1464_p9)
}
  0x18   :  { %s1498_s7 = smov 256   ;;  %s1499_s8 = smov 16  }
  0x19   :  { %41 = dma.hbm_to_vmem [thread:$0]  %s1923_s3, 2048, %s36_s29, [#allocation7], %s1498_s7, %s1498_s7, %s1499_s8  }
  0x1a   :  { %1488 = dma.done.wait [#allocation4], 1024  }
  0x1b   :  { %1489 = vsyncadd [#allocation4], 4294966272 }
  0x1c   :  { %1490 = dma.done.wait [#allocation7], 2048  }
  0x1d   :  { %1491 = vsyncadd [#allocation7], 4294965248  ;;  %v1500_v0 = vmov 0.0   ;;  %v75_v1 = vld [vmem:[%s1921_s1 + $0x78] sm:$0xff]  ;;  %v74_v2 = vld [vmem:[%s1921_s1 + $0x70] sm:$0xff]  ;;  %vm88_vm0 = vcmask 523264   ;;  %v78_v38 = vlaneseq }
  0x1e   :  { %201 = vmatprep.mubr.f32.mxu1 %v1500_v0  ;;  %177 = vmatprep.mubr.f32.mxu0 %v1500_v0  ;;  %v73_v3 = vld [vmem:[%s1921_s1 + $0x68] sm:$0xff]  ;;  %v72_v4 = vld [vmem:[%s1921_s1 + $0x60] sm:$0xff]  ;;  %v71_v5 = vld [vmem:[%s1921_s1 + $0x58] sm:$0xff]  ;;  %vm1502_vm1 = vmmov 0   ;;  %s1503_s23 = smov [#allocation8]   ;;  %vm1195_vm2 = vcmask 64512  }
  0x1f   :  { %1304 = vmatprep.subr.mxu1 %v75_v1  ;;  %129 = vmatprep.subr.mxu0 %v75_v1  ;;  %v70_v6 = vld [vmem:[%s1921_s1 + $0x50] sm:$0xff]  ;;  %v69_v7 = vld [vmem:[%s1921_s1 + $0x48] sm:$0xff]  ;;  %v68_v8 = vld [vmem:[%s1921_s1 + $0x40] sm:$0xff]  ;;  %v79_v41 = vshrl.u32 %v78_v38, 7  ;;  %s1203_s24 = sshll.u32 %s1503_s23, 4  ;;  %s1204_s24 = int_to_ptr.vmem [resolvable:$true] %s1203_s24 }
  0x20   :  { %1312 = vmatpush1.msra.mxu1 %v74_v2  ;;  %130 = vmatpush1.msra.mxu0 %v74_v2  ;;  %v67_v9 = vld [vmem:[%s1921_s1 + $0x38] sm:$0xff]  ;;  %v66_v10 = vld [vmem:[%s1921_s1 + $0x30] sm:$0xff]  ;;  %v65_v11 = vld [vmem:[%s1921_s1 + $0x28] sm:$0xff]  ;;  %p1473_p11 = scmp.lt.s32.totalorder %s1204_s24, %s1204_s24 }
  0x21   :  { %1305 = vmatprep.subr.mxu1 %v73_v3  ;;  %131 = vmatprep.subr.mxu0 %v73_v3  ;;  %v64_v12 = vld [vmem:[%s1921_s1 + $0x20] sm:$0xff]  ;;  %v63_v13 = vld [vmem:[%s1921_s1 + $0x18] sm:$0xff]  ;;  %v62_v14 = vld [vmem:[%s1921_s1 + $0x10] sm:$0xff]  ;;  %v80_v44 = vsub.s32 0, %v79_v41  ;;  %v84_v56 = vsub.s32 1, %v79_v41 }
  0x22   :  { %1313 = vmatpush1.msra.mxu1 %v72_v4  ;;  %132 = vmatpush1.msra.mxu0 %v72_v4  ;;  %v61_v15 = vld [vmem:[%s1921_s1 + $0x8] sm:$0xff]  ;;  %v60_v16 = vld [vmem:[%s1921_s1] sm:$0xff]  ;;  %v1595_v18 = vld [vmem:[#allocation6 + $0x78] sm:$0xff] }
  0x23   :  { %1306 = vmatprep.subr.mxu1 %v71_v5  ;;  %133 = vmatprep.subr.mxu0 %v71_v5  ;;  %v56_v17 = vld [vmem:[#allocation3 + $0x20] sm:$0xff]  ;;  %v1597_v19 = vld [vmem:[#allocation6 + $0x70] sm:$0xff]  ;;  %v1599_v20 = vld [vmem:[#allocation6 + $0x68] sm:$0xff] }
  0x24   :  { %1314 = vmatpush1.msra.mxu1 %v70_v6  ;;  %134 = vmatpush1.msra.mxu0 %v70_v6  ;;  %v52_v21 = vld [vmem:[#allocation3] sm:$0xff]  ;;  %v57_v23 = vld [vmem:[#allocation3 + $0x28] sm:$0xff]  ;;  %v1607_v24 = vld [vmem:[#allocation6 + $0x58] sm:$0xff] }
  0x25   :  { %1307 = vmatprep.subr.mxu1 %v69_v7  ;;  %135 = vmatprep.subr.mxu0 %v69_v7  ;;  %v1603_v22 = vld [vmem:[#allocation6 + $0x60] sm:$0xff]  ;;  %v1610_v25 = vld [vmem:[#allocation6 + $0x50] sm:$0xff]  ;;  %v1614_v26 = vld [vmem:[#allocation6 + $0x48] sm:$0xff] }
  0x26   :  { %1315 = vmatpush1.msra.mxu1 %v68_v8  ;;  %136 = vmatpush1.msra.mxu0 %v68_v8  ;;  %v1619_v27 = vld [vmem:[#allocation6 + $0x40] sm:$0xff]  ;;  %v58_v28 = vld [vmem:[#allocation3 + $0x30] sm:$0xff]  ;;  %v1623_v29 = vld [vmem:[#allocation6 + $0x38] sm:$0xff] }
  0x27   :  { %1308 = vmatprep.subr.mxu1 %v67_v9  ;;  %137 = vmatprep.subr.mxu0 %v67_v9  ;;  %v1626_v30 = vld [vmem:[#allocation6 + $0x30] sm:$0xff]  ;;  %v1630_v31 = vld [vmem:[#allocation6 + $0x28] sm:$0xff]  ;;  %v1635_v32 = vld [vmem:[#allocation6 + $0x20] sm:$0xff] }
  0x28   :  { %1316 = vmatpush1.msra.mxu1 %v66_v10  ;;  %138 = vmatpush1.msra.mxu0 %v66_v10  ;;  %v59_v33 = vld [vmem:[#allocation3 + $0x38] sm:$0xff]  ;;  %v1642_v35 = vld [vmem:[#allocation6 + $0x10] sm:$0xff]  ;;  %v1646_v36 = vld [vmem:[#allocation6 + $0x8] sm:$0xff] }
  0x29   :  { %1309 = vmatprep.subr.mxu1 %v65_v11  ;;  %139 = vmatprep.subr.mxu0 %v65_v11  ;;  %v1639_v34 = vld [vmem:[#allocation6 + $0x18] sm:$0xff]  ;;  %v1651_v37 = vld [vmem:[#allocation6] sm:$0xff]  ;;  %v53_v4 = vld [vmem:[#allocation3 + $0x8] sm:$0xff] }
  0x2a   :  { %1317 = vmatpush1.msra.mxu1 %v64_v12  ;;  %140 = vmatpush1.msra.mxu0 %v64_v12  ;;  %v76_v45 = vld [vmem:[%s1922_s2] sm:$0x3]  ;;  %s1501_s2 = smov 64  }
  0x2b   :  { %1310 = vmatprep.subr.mxu1 %v63_v13  ;;  %141 = vmatprep.subr.mxu0 %v63_v13  ;;  %v1704_v48 = vrot.slane %v76_v45, %v80_v44  ;;  %v1711_v58 = vrot.slane %v76_v45, %v84_v56 }
  0x2c   :  { %1318 = vmatpush1.msra.mxu1 %v62_v14  ;;  %142 = vmatpush1.msra.mxu0 %v62_v14 }
  0x2d   :  { %1311 = vmatprep.subr.mxu1 %v61_v15  ;;  %143 = vmatprep.subr.mxu0 %v61_v15 }
  0x2e   :  { %1319 = vmatpush1.msra.mxu1 %v60_v16  ;;  %144 = vmatpush1.msra.mxu0 %v60_v16 }
  0x2f   :  { %1224 = vmatmul.mubr.msk.f32.vlgmr.msra.gmra.mxu1 %vm88_vm0, %v56_v17  ;;  %282 = vmatprep.subr.mxu1 %v1595_v18 }
  0x30   :  { %283 = vmatpush1.msra.mxu1 %v1597_v19  ;;  %207 = vmatprep.mubr.f32.mxu1 %v1500_v0 }
  0x31   :  { %284 = vmatprep.subr.mxu1 %v1599_v20  ;;  %1220 = vmatmul.mubr.msk.f32.vlgmr.msra.gmra.mxu0 %vm88_vm0, %v52_v21 }
  0x32   :  { %285 = vmatpush1.msra.mxu1 %v1603_v22  ;;  %183 = vmatprep.mubr.f32.mxu0 %v1500_v0 }
  0x33   :  { %1225 = vmatmul.mubr.msk.f32.gmra.mxu1 %vm88_vm0, %v57_v23  ;;  %286 = vmatprep.subr.mxu1 %v1607_v24 }
  0x34   :  { %287 = vmatpush1.msra.mxu1 %v1610_v25  ;;  %213 = vmatprep.mubr.f32.mxu1 %v1500_v0 }
  0x35   :  { %288 = vmatprep.subr.mxu1 %v1614_v26  ;;  %492 = vmatprep.subr.mxu0 %v1595_v18 }
  0x36   :  { %289 = vmatpush1.msra.mxu1 %v1619_v27  ;;  %493 = vmatpush1.msra.mxu0 %v1597_v19 }
  0x37   :  { %1226 = vmatmul.mubr.msk.f32.gmra.mxu1 %vm88_vm0, %v58_v28  ;;  %290 = vmatprep.subr.mxu1 %v1623_v29 }
  0x38   :  { %291 = vmatpush1.msra.mxu1 %v1626_v30  ;;  %219 = vmatprep.mubr.f32.mxu1 %v1500_v0 }
  0x39   :  { %292 = vmatprep.subr.mxu1 %v1630_v31  ;;  %494 = vmatprep.subr.mxu0 %v1599_v20 }
  0x3a   :  { %293 = vmatpush1.msra.mxu1 %v1635_v32  ;;  %495 = vmatpush1.msra.mxu0 %v1603_v22 }
  0x3b   :  { %1227 = vmatmul.mubr.msk.f32.gmra.mxu1 %vm88_vm0, %v59_v33  ;;  %294 = vmatprep.subr.mxu1 %v1639_v34 }
  0x3c   :  { %295 = vmatpush1.msra.mxu1 %v1642_v35  ;;  %330 = vmatprep.mubr.f32.mxu1 %v1500_v0 }
  0x3d   :  { %296 = vmatprep.subr.mxu1 %v1646_v36  ;;  %496 = vmatprep.subr.mxu0 %v1607_v24 }
  0x3e   :  { %297 = vmatpush1.msra.mxu1 %v1651_v37  ;;  %497 = vmatpush1.msra.mxu0 %v1610_v25 }
  0x3f   :  { %331 = vmatmul.mubr.f32.vlgmr.msra.gmra.mxu1 %v1500_v0  ;;  %387 = vmatprep.subr.mxu1 %v1595_v18 }
  0x40   :  { %388 = vmatpush1.msra.mxu1 %v1597_v19  ;;  %435 = vmatprep.mubr.f32.mxu1 %v1500_v0 }
  0x41   :  { %389 = vmatprep.subr.mxu1 %v1599_v20  ;;  %498 = vmatprep.subr.mxu0 %v1614_v26 }
  0x42   :  { %390 = vmatpush1.msra.mxu1 %v1603_v22  ;;  %499 = vmatpush1.msra.mxu0 %v1619_v27 }
  0x43   :  { %391 = vmatprep.subr.mxu1 %v1607_v24  ;;  %500 = vmatprep.subr.mxu0 %v1623_v29 }
  0x44   :  { %392 = vmatpush1.msra.mxu1 %v1610_v25  ;;  %501 = vmatpush1.msra.mxu0 %v1626_v30 }
  0x45   :  { %393 = vmatprep.subr.mxu1 %v1614_v26  ;;  %502 = vmatprep.subr.mxu0 %v1630_v31 }
  0x46   :  { %394 = vmatpush1.msra.mxu1 %v1619_v27  ;;  %503 = vmatpush1.msra.mxu0 %v1635_v32 }
  0x47   :  { %395 = vmatprep.subr.mxu1 %v1623_v29  ;;  %504 = vmatprep.subr.mxu0 %v1639_v34 }
  0x48   :  { %396 = vmatpush1.msra.mxu1 %v1626_v30  ;;  %505 = vmatpush1.msra.mxu0 %v1642_v35 }
  0x49   :  { %397 = vmatprep.subr.mxu1 %v1630_v31  ;;  %506 = vmatprep.subr.mxu0 %v1646_v36 }
  0x4a   :  { %398 = vmatpush1.msra.mxu1 %v1635_v32  ;;  %507 = vmatpush1.msra.mxu0 %v1651_v37 }
  0x4b   :  { %399 = vmatprep.subr.mxu1 %v1639_v34  ;;  %702 = vmatprep.subr.mxu0 %v1595_v18 }
  0x4c   :  { %400 = vmatpush1.msra.mxu1 %v1642_v35  ;;  %1221 = vmatmul.mubr.msk.f32.gmra.mxu0 %vm88_vm0, %v53_v4 }
  0x4d   :  { %401 = vmatprep.subr.mxu1 %v1646_v36  ;;  %189 = vmatprep.mubr.f32.mxu0 %v1500_v0 }
  0x4e   :  { %402 = vmatpush1.msra.mxu1 %v1651_v37 }
  0x4f   :  { %597 = vmatprep.subr.mxu1 %v1595_v18 }
  0xef   :  { %v1689_v39 = vpop.f32.mrf.mxu1 }
  0xf1   :  { %v1691_v40 = vpop.f32.mrf.mxu1  ;;  %v179_v50 = vpop.f32.mrf.mxu0 }
  0xf2   :  { %v180_v51 = vadd.f32 %v179_v50, %v1704_v48 }
  0xf3   :  { %v1693_v42 = vpop.f32.mrf.mxu1  ;;  %v181_v57 = vpop.f32.mrf.mxu0 }
  0xf4   :  { %v182_v60 = vadd.f32 %v181_v57, %v1711_v58 }
  0xf5   :  { %v1695_v43 = vpop.f32.mrf.mxu1 }
  0xf7   :  { %v1700_v46 = vpop.f32.mrf.mxu1 }
  0xf9   :  { %v1702_v47 = vpop.f32.mrf.mxu1 }
  0xfb   :  { %v1706_v49 = vpop.f32.mrf.mxu1 }
  0xfd   :  { %v1709_v52 = vpop.f32.mrf.mxu1 }
  0xff   :  { %v332_v53 = vpop.f32.mrf.mxu1 }
 0x100   :  { %v337_v54 = vadd.f32 %v332_v53, %v180_v51 }
 0x101   :  { %v334_v59 = vpop.f32.mrf.mxu1 }
 0x102   :  { %v1228_v55 = vmul.f32 -1.442695, %v337_v54  ;;  %v338_v61 = vadd.f32 %v334_v59, %v182_v60  ;;  %v54_v54 = vld [vmem:[#allocation3 + $0x10] sm:$0xff] }
 0x103   :  { %1222 = vmatmul.mubr.msk.f32.gmra.mxu0 %vm88_vm0, %v54_v54 }
 0x104   :  { %1330 = vpow2.f32 %v1228_v55  ;;  %v1229_v5 = vmul.f32 -1.442695, %v338_v61  ;;  %195 = vmatprep.mubr.f32.mxu0 %v1500_v0  ;;  %v55_v55 = vld [vmem:[#allocation3 + $0x18] sm:$0xff] }
 0x105   :  { %1332 = vtanh.f32 %v338_v61 }
 0x107   :  { %1223 = vmatmul.mubr.msk.f32.gmra.mxu0 %vm88_vm0, %v55_v55 }
 0x108   :  { %540 = vmatprep.mubr.f32.mxu0 %v1500_v0 }
 0x10c   :  { %v185_v15 = vpop.f32.mrf.mxu0 }
 0x10d   :  { %v186_v16 = vadd.f32 %v185_v15, %v1704_v48 }
 0x10e   :  { %v187_v28 = vpop.f32.mrf.mxu0 }
 0x10f   :  { %v188_v38 = vadd.f32 %v187_v28, %v1711_v58 }
 0x111   :  { %v1331_v62 = vpop.eup %1330 }
 0x112   :  { %v342_v63 = vadd.f32 1.0, %v1331_v62  ;;  %v1333_v1 = vpop.eup %1332 }
 0x114   :  { %1334 = vrcp.f32 %v342_v63 }
 0x115   :  { %1336 = vpow2.f32 %v1229_v5 }
 0x121   :  { %v1335_v2 = vpop.eup %1334 }
 0x122   :  { %v353_v3 = vmul.f32 %v1335_v2, %v1333_v1  ;;  %v1337_v6 = vpop.eup %1336  ;;  %v352_v8 = vmul.f32 0.0, %v1335_v2 }
 0x123   :  { %v349_v7 = vadd.f32 1.0, %v1337_v6 }
 0x124   :  { %355 = vrot.lane.b32.xlu0 %v353_v3, %s1501_s2 }
 0x125   :  { %1338 = vrcp.f32 %v349_v7 }
 0x132   :  { %v1339_v11 = vpop.eup %1338 }
 0x196   :  { %v356_v9 = vpop.permute.xlu0 %355 }
 0x197   :  { %v358_v10 = vadd.f32 %v356_v9, %v352_v8 }
 0x199   :  { %1340 = vtanh.f32 %v358_v10 }
 0x1a6   :  { %v1341_v12 = vpop.eup %1340 }
 0x1a7   :  { %v360_v13 = vmul.f32 %v1341_v12, %v1339_v11 }
 0x1a9   :  { %367 = vrot.lane.b32.xlu0 %v360_v13, %s1501_s2 }
 0x1c3   :  { %v191_v4 = vpop.f32.mrf.mxu0 }
 0x1c4   :  { %v192_v8 = vadd.f32 %v191_v4, %v1704_v48 }
 0x1c5   :  { %v193_v5 = vpop.f32.mrf.mxu0 }
 0x1c6   :  { %v194_v13 = vadd.f32 %v193_v5, %v1711_v58 }
 0x1c7   :  { %v197_v6 = vpop.f32.mrf.mxu0 }
 0x1c8   :  { %v198_v55 = vadd.f32 %v197_v6, %v1704_v48 }
 0x1c9   :  { %v199_v7 = vpop.f32.mrf.mxu0 }
 0x21b   :  { %v368_v14 = vpop.permute.xlu0 %367 }
 0x21c   :  { %1230 = vmatmul.mubr.msk.f32.vlgmr.msra.gmra.mxu1 %vm88_vm0, %v368_v14 }
 0x21d   :  { %598 = vmatpush1.msra.mxu1 %v1597_v19  ;;  %645 = vmatprep.mubr.f32.mxu1 %v1500_v0 }
 0x21e   :  { %599 = vmatprep.subr.mxu1 %v1599_v20 }
 0x21f   :  { %600 = vmatpush1.msra.mxu1 %v1603_v22 }
 0x220   :  { %601 = vmatprep.subr.mxu1 %v1607_v24 }
 0x221   :  { %602 = vmatpush1.msra.mxu1 %v1610_v25 }
 0x222   :  { %603 = vmatprep.subr.mxu1 %v1614_v26 }
 0x223   :  { %604 = vmatpush1.msra.mxu1 %v1619_v27 }
 0x224   :  { %605 = vmatprep.subr.mxu1 %v1623_v29 }
 0x225   :  { %606 = vmatpush1.msra.mxu1 %v1626_v30 }
 0x226   :  { %607 = vmatprep.subr.mxu1 %v1630_v31 }
 0x227   :  { %608 = vmatpush1.msra.mxu1 %v1635_v32 }
 0x228   :  { %609 = vmatprep.subr.mxu1 %v1639_v34 }
 0x229   :  { %610 = vmatpush1.msra.mxu1 %v1642_v35 }
 0x22a   :  { %611 = vmatprep.subr.mxu1 %v1646_v36 }
 0x22b   :  { %612 = vmatpush1.msra.mxu1 %v1651_v37 }
 0x22c   :  { %807 = vmatprep.subr.mxu1 %v1595_v18 }
 0x2dc   :  { %v437_v17 = vpop.f32.mrf.mxu1 }
 0x2dd   :  { %v442_v21 = vadd.f32 %v437_v17, %v186_v16 }
 0x2de   :  { %v439_v33 = vpop.f32.mrf.mxu1 }
 0x2df   :  { %v1231_v23 = vmul.f32 -1.442695, %v442_v21  ;;  %v443_v41 = vadd.f32 %v439_v33, %v188_v38 }
 0x2e1   :  { %1342 = vpow2.f32 %v1231_v23  ;;  %v1232_v56 = vmul.f32 -1.442695, %v443_v41 }
 0x2e2   :  { %1344 = vtanh.f32 %v443_v41 }
 0x2ee   :  { %v1343_v44 = vpop.eup %1342 }
 0x2ef   :  { %v447_v45 = vadd.f32 1.0, %v1343_v44  ;;  %v1345_v50 = vpop.eup %1344 }
 0x2f1   :  { %1346 = vrcp.f32 %v447_v45 }
 0x2f2   :  { %1348 = vpow2.f32 %v1232_v56 }
 0x2fe   :  { %v1347_v51 = vpop.eup %1346 }
 0x2ff   :  { %v458_v53 = vmul.f32 %v1347_v51, %v1345_v50  ;;  %v1349_v57 = vpop.eup %1348  ;;  %v457_v60 = vmul.f32 %v1347_v51, %v358_v10 }
 0x300   :  { %v454_v59 = vadd.f32 1.0, %v1349_v57 }
 0x301   :  { %460 = vrot.lane.b32.xlu1 %v458_v53, %s1501_s2 }
 0x302   :  { %1350 = vrcp.f32 %v454_v59 }
 0x30f   :  { %v1351_v63 = vpop.eup %1350 }
 0x373   :  { %v461_v61 = vpop.permute.xlu1 %460 }
 0x374   :  { %v463_v62 = vadd.f32 %v461_v61, %v457_v60  ;;  %v200_v61 = vadd.f32 %v199_v7, %v1711_v58 }
 0x376   :  { %1352 = vtanh.f32 %v463_v62 }
 0x383   :  { %v1353_v1 = vpop.eup %1352 }
 0x384   :  { %v465_v2 = vmul.f32 %v1353_v1, %v1351_v63 }
 0x386   :  { %472 = vrot.lane.b32.xlu1 %v465_v2, %s1501_s2 }
 0x3f8   :  { %v473_v3 = vpop.permute.xlu1 %472 }
 0x3f9   :  { %1233 = vmatmul.mubr.msk.f32.vlgmr.msra.gmra.mxu0 %vm88_vm0, %v473_v3 }
 0x3fa   :  { %703 = vmatpush1.msra.mxu0 %v1597_v19  ;;  %750 = vmatprep.mubr.f32.mxu0 %v1500_v0 }
 0x3fb   :  { %704 = vmatprep.subr.mxu0 %v1599_v20 }
 0x3fc   :  { %705 = vmatpush1.msra.mxu0 %v1603_v22 }
 0x3fd   :  { %706 = vmatprep.subr.mxu0 %v1607_v24 }
 0x3fe   :  { %707 = vmatpush1.msra.mxu0 %v1610_v25 }
 0x3ff   :  { %708 = vmatprep.subr.mxu0 %v1614_v26 }
 0x400   :  { %709 = vmatpush1.msra.mxu0 %v1619_v27 }
 0x401   :  { %710 = vmatprep.subr.mxu0 %v1623_v29 }
 0x402   :  { %711 = vmatpush1.msra.mxu0 %v1626_v30 }
 0x403   :  { %712 = vmatprep.subr.mxu0 %v1630_v31 }
 0x404   :  { %713 = vmatpush1.msra.mxu0 %v1635_v32 }
 0x405   :  { %714 = vmatprep.subr.mxu0 %v1639_v34 }
 0x406   :  { %715 = vmatpush1.msra.mxu0 %v1642_v35 }
 0x407   :  { %716 = vmatprep.subr.mxu0 %v1646_v36 }
 0x408   :  { %717 = vmatpush1.msra.mxu0 %v1651_v37 }
 0x409   :  { %912 = vmatprep.subr.mxu0 %v1595_v18 }
 0x4b9   :  { %v542_v9 = vpop.f32.mrf.mxu0 }
 0x4ba   :  { %v547_v10 = vadd.f32 %v542_v9, %v192_v8 }
 0x4bb   :  { %v544_v12 = vpop.f32.mrf.mxu0 }
 0x4bc   :  { %v1234_v11 = vmul.f32 -1.442695, %v547_v10  ;;  %v548_v14 = vadd.f32 %v544_v12, %v194_v13 }
 0x4be   :  { %1354 = vpow2.f32 %v1234_v11  ;;  %v1235_v28 = vmul.f32 -1.442695, %v548_v14 }
 0x4bf   :  { %1356 = vtanh.f32 %v548_v14  ;;  %v204_v14 = vadd.f32 %v1689_v39, %v1704_v48 }
 0x4cb   :  { %v1355_v15 = vpop.eup %1354 }
 0x4cc   :  { %v552_v16 = vadd.f32 1.0, %v1355_v15  ;;  %v1357_v17 = vpop.eup %1356 }
 0x4ce   :  { %1358 = vrcp.f32 %v552_v16 }
 0x4cf   :  { %1360 = vpow2.f32 %v1235_v28 }
 0x4db   :  { %v1359_v21 = vpop.eup %1358 }
 0x4dc   :  { %v563_v23 = vmul.f32 %v1359_v21, %v1357_v17  ;;  %v1361_v33 = vpop.eup %1360  ;;  %v562_v41 = vmul.f32 %v1359_v21, %v463_v62 }
 0x4dd   :  { %v559_v38 = vadd.f32 1.0, %v1361_v33 }
 0x4de   :  { %565 = vrot.lane.b32.xlu0 %v563_v23, %s1501_s2  ;;  %v206_v23 = vadd.f32 %v1691_v40, %v1711_v58 }
 0x4df   :  { %1362 = vrcp.f32 %v559_v38 }
 0x4ec   :  { %v1363_v50 = vpop.eup %1362 }
 0x550   :  { %v566_v44 = vpop.permute.xlu0 %565 }
 0x551   :  { %v568_v45 = vadd.f32 %v566_v44, %v562_v41 }
 0x553   :  { %1364 = vtanh.f32 %v568_v45 }
 0x560   :  { %v1365_v51 = vpop.eup %1364 }
 0x561   :  { %v570_v53 = vmul.f32 %v1365_v51, %v1363_v50 }
 0x563   :  { %577 = vrot.lane.b32.xlu1 %v570_v53, %s1501_s2 }
 0x5d5   :  { %v578_v54 = vpop.permute.xlu1 %577 }
 0x5d6   :  { %1236 = vmatmul.mubr.msk.f32.vlgmr.msra.gmra.mxu1 %vm88_vm0, %v578_v54 }
 0x5d7   :  { %808 = vmatpush1.msra.mxu1 %v1597_v19  ;;  %855 = vmatprep.mubr.f32.mxu1 %v1500_v0 }
 0x5d8   :  { %809 = vmatprep.subr.mxu1 %v1599_v20 }
 0x5d9   :  { %810 = vmatpush1.msra.mxu1 %v1603_v22 }
 0x5da   :  { %811 = vmatprep.subr.mxu1 %v1607_v24 }
 0x5db   :  { %812 = vmatpush1.msra.mxu1 %v1610_v25 }
 0x5dc   :  { %813 = vmatprep.subr.mxu1 %v1614_v26 }
 0x5dd   :  { %814 = vmatpush1.msra.mxu1 %v1619_v27 }
 0x5de   :  { %815 = vmatprep.subr.mxu1 %v1623_v29 }
 0x5df   :  { %816 = vmatpush1.msra.mxu1 %v1626_v30 }
 0x5e0   :  { %817 = vmatprep.subr.mxu1 %v1630_v31 }
 0x5e1   :  { %818 = vmatpush1.msra.mxu1 %v1635_v32 }
 0x5e2   :  { %819 = vmatprep.subr.mxu1 %v1639_v34 }
 0x5e3   :  { %820 = vmatpush1.msra.mxu1 %v1642_v35 }
 0x5e4   :  { %821 = vmatprep.subr.mxu1 %v1646_v36 }
 0x5e5   :  { %822 = vmatpush1.msra.mxu1 %v1651_v37 }
 0x5e6   :  { %1017 = vmatprep.subr.mxu1 %v1595_v18 }
 0x696   :  { %v647_v56 = vpop.f32.mrf.mxu1 }
 0x697   :  { %v652_v57 = vadd.f32 %v647_v56, %v198_v55 }
 0x698   :  { %v649_v60 = vpop.f32.mrf.mxu1 }
 0x699   :  { %v1237_v59 = vmul.f32 -1.442695, %v652_v57  ;;  %v653_v62 = vadd.f32 %v649_v60, %v200_v61 }
 0x69b   :  { %1366 = vpow2.f32 %v1237_v59  ;;  %v1238_v18 = vmul.f32 -1.442695, %v653_v62 }
 0x69c   :  { %1368 = vtanh.f32 %v653_v62 }
 0x6a8   :  { %v1367_v63 = vpop.eup %1366 }
 0x6a9   :  { %v657_v1 = vadd.f32 1.0, %v1367_v63  ;;  %v1369_v2 = vpop.eup %1368 }
 0x6ab   :  { %1370 = vrcp.f32 %v657_v1 }
 0x6ac   :  { %1372 = vpow2.f32 %v1238_v18 }
 0x6b8   :  { %v1371_v3 = vpop.eup %1370 }
 0x6b9   :  { %v668_v4 = vmul.f32 %v1371_v3, %v1369_v2  ;;  %v1373_v5 = vpop.eup %1372  ;;  %v667_v8 = vmul.f32 %v1371_v3, %v568_v45  ;;  %v216_v2 = vadd.f32 %v1700_v46, %v1704_v48 }
 0x6ba   :  { %v664_v6 = vadd.f32 1.0, %v1373_v5 }
 0x6bb   :  { %670 = vrot.lane.b32.xlu0 %v668_v4, %s1501_s2 }
 0x6bc   :  { %1374 = vrcp.f32 %v664_v6  ;;  %v218_v6 = vadd.f32 %v1702_v47, %v1711_v58 }
 0x6c9   :  { %v1375_v7 = vpop.eup %1374 }
 0x72d   :  { %v671_v9 = vpop.permute.xlu0 %670 }
 0x72e   :  { %v673_v10 = vadd.f32 %v671_v9, %v667_v8 }
 0x730   :  { %1376 = vtanh.f32 %v673_v10 }
 0x73d   :  { %v1377_v11 = vpop.eup %1376 }
 0x73e   :  { %v675_v12 = vmul.f32 %v1377_v11, %v1375_v7 }
 0x740   :  { %682 = vrot.lane.b32.xlu1 %v675_v12, %s1501_s2 }
 0x7b2   :  { %v683_v13 = vpop.permute.xlu1 %682 }
 0x7b3   :  { %1239 = vmatmul.mubr.msk.f32.vlgmr.msra.gmra.mxu0 %vm88_vm0, %v683_v13 }
 0x7b4   :  { %913 = vmatpush1.msra.mxu0 %v1597_v19  ;;  %960 = vmatprep.mubr.f32.mxu0 %v1500_v0 }
 0x7b5   :  { %914 = vmatprep.subr.mxu0 %v1599_v20 }
 0x7b6   :  { %915 = vmatpush1.msra.mxu0 %v1603_v22 }
 0x7b7   :  { %916 = vmatprep.subr.mxu0 %v1607_v24 }
 0x7b8   :  { %917 = vmatpush1.msra.mxu0 %v1610_v25 }
 0x7b9   :  { %918 = vmatprep.subr.mxu0 %v1614_v26 }
 0x7ba   :  { %919 = vmatpush1.msra.mxu0 %v1619_v27 }
 0x7bb   :  { %920 = vmatprep.subr.mxu0 %v1623_v29 }
 0x7bc   :  { %921 = vmatpush1.msra.mxu0 %v1626_v30 }
 0x7bd   :  { %922 = vmatprep.subr.mxu0 %v1630_v31 }
 0x7be   :  { %923 = vmatpush1.msra.mxu0 %v1635_v32 }
 0x7bf   :  { %924 = vmatprep.subr.mxu0 %v1639_v34 }
 0x7c0   :  { %925 = vmatpush1.msra.mxu0 %v1642_v35 }
 0x7c1   :  { %926 = vmatprep.subr.mxu0 %v1646_v36 }
 0x7c2   :  { %927 = vmatpush1.msra.mxu0 %v1651_v37 }
 0x7c3   :  { %1269 = vmatprep.subr.mxu0 %v1500_v0 }
 0x873   :  { %v752_v15 = vpop.f32.mrf.mxu0 }
 0x874   :  { %v757_v16 = vadd.f32 %v752_v15, %v204_v14 }
 0x875   :  { %v754_v21 = vpop.f32.mrf.mxu0 }
 0x876   :  { %v1240_v17 = vmul.f32 -1.442695, %v757_v16  ;;  %v758_v28 = vadd.f32 %v754_v21, %v206_v23 }
 0x878   :  { %1378 = vpow2.f32 %v1240_v17  ;;  %v1241_v50 = vmul.f32 -1.442695, %v758_v28 }
 0x879   :  { %1380 = vtanh.f32 %v758_v28 }
 0x885   :  { %v1379_v33 = vpop.eup %1378 }
 0x886   :  { %v762_v38 = vadd.f32 1.0, %v1379_v33  ;;  %v1381_v41 = vpop.eup %1380  ;;  %v222_v33 = vadd.f32 %v1706_v49, %v1704_v48  ;;  %v1116_v49 = vld [vmem:[%s1924_s4 + $0x70] sm:$0xff] }
 0x888   :  { %1382 = vrcp.f32 %v762_v38 }
 0x889   :  { %1384 = vpow2.f32 %v1241_v50  ;;  %v224_v50 = vadd.f32 %v1709_v52, %v1711_v58  ;;  %v1115_v52 = vld [vmem:[%s1924_s4 + $0x68] sm:$0xff] }
 0x895   :  { %v1383_v44 = vpop.eup %1382 }
 0x896   :  { %v773_v45 = vmul.f32 %v1383_v44, %v1381_v41  ;;  %v1385_v39 = vpop.eup %1384  ;;  %v772_v53 = vmul.f32 %v1383_v44, %v673_v10 }
 0x897   :  { %v769_v51 = vadd.f32 1.0, %v1385_v39 }
 0x898   :  { %775 = vrot.lane.b32.xlu0 %v773_v45, %s1501_s2 }
 0x899   :  { %1386 = vrcp.f32 %v769_v51 }
 0x8a6   :  { %v1387_v40 = vpop.eup %1386 }
 0x90a   :  { %v776_v54 = vpop.permute.xlu0 %775 }
 0x90b   :  { %v778_v55 = vadd.f32 %v776_v54, %v772_v53 }
 0x90d   :  { %1388 = vtanh.f32 %v778_v55 }
 0x91a   :  { %v1389_v56 = vpop.eup %1388 }
 0x91b   :  { %v780_v57 = vmul.f32 %v1389_v56, %v1387_v40  ;;  %v1113_v56 = vld [vmem:[%s1924_s4 + $0x58] sm:$0xff] }
 0x91d   :  { %787 = vrot.lane.b32.xlu1 %v780_v57, %s1501_s2  ;;  %v1112_v57 = vld [vmem:[%s1924_s4 + $0x50] sm:$0xff] }
 0x98f   :  { %v788_v59 = vpop.permute.xlu1 %787 }
 0x990   :  { %1242 = vmatmul.mubr.msk.f32.vlgmr.msra.gmra.mxu1 %vm88_vm0, %v788_v59  ;;  %v1111_v59 = vld [vmem:[%s1924_s4 + $0x48] sm:$0xff] }
 0x991   :  { %1018 = vmatpush1.msra.mxu1 %v1597_v19  ;;  %1065 = vmatprep.mubr.f32.mxu1 %v1500_v0  ;;  %v210_v19 = vadd.f32 %v1693_v42, %v1704_v48  ;;  %v1117_v48 = vld [vmem:[%s1924_s4 + $0x78] sm:$0xff] }
 0x992   :  { %1019 = vmatprep.subr.mxu1 %v1599_v20 }
 0x993   :  { %1020 = vmatpush1.msra.mxu1 %v1603_v22 }
 0x994   :  { %1021 = vmatprep.subr.mxu1 %v1607_v24 }
 0x995   :  { %1022 = vmatpush1.msra.mxu1 %v1610_v25 }
 0x996   :  { %1023 = vmatprep.subr.mxu1 %v1614_v26  ;;  %v212_v26 = vadd.f32 %v1695_v43, %v1711_v58  ;;  %v1114_v58 = vld [vmem:[%s1924_s4 + $0x60] sm:$0xff] }
 0x997   :  { %1024 = vmatpush1.msra.mxu1 %v1619_v27 }
 0x998   :  { %1025 = vmatprep.subr.mxu1 %v1623_v29 }
 0x999   :  { %1026 = vmatpush1.msra.mxu1 %v1626_v30 }
 0x99a   :  { %1027 = vmatprep.subr.mxu1 %v1630_v31 }
 0x99b   :  { %1028 = vmatpush1.msra.mxu1 %v1635_v32 }
 0x99c   :  { %1029 = vmatprep.subr.mxu1 %v1639_v34 }
 0x99d   :  { %1030 = vmatpush1.msra.mxu1 %v1642_v35 }
 0x99e   :  { %1031 = vmatprep.subr.mxu1 %v1646_v36 }
 0x99f   :  { %1032 = vmatpush1.msra.mxu1 %v1651_v37 }
 0xa50   :  { %v857_v20 = vpop.f32.mrf.mxu1 }
 0xa51   :  { %v862_v22 = vadd.f32 %v857_v20, %v210_v19  ;;  %v1110_v19 = vld [vmem:[%s1924_s4 + $0x40] sm:$0xff] }
 0xa52   :  { %v859_v25 = vpop.f32.mrf.mxu1 }
 0xa53   :  { %v1243_v24 = vmul.f32 -1.442695, %v862_v22  ;;  %v863_v27 = vadd.f32 %v859_v25, %v212_v26 }
 0xa55   :  { %1390 = vpow2.f32 %v1243_v24  ;;  %v1244_v35 = vmul.f32 -1.442695, %v863_v27 }
 0xa56   :  { %1392 = vtanh.f32 %v863_v27 }
 0xa62   :  { %v1391_v29 = vpop.eup %1390 }
 0xa63   :  { %v867_v30 = vadd.f32 1.0, %v1391_v29  ;;  %v1393_v31 = vpop.eup %1392  ;;  %v1109_v29 = vld [vmem:[%s1924_s4 + $0x38] sm:$0xff] }
 0xa65   :  { %1394 = vrcp.f32 %v867_v30  ;;  %v1108_v30 = vld [vmem:[%s1924_s4 + $0x30] sm:$0xff] }
 0xa66   :  { %1396 = vpow2.f32 %v1244_v35  ;;  %v1104_v35 = vld [vmem:[%s1924_s4 + $0x10] sm:$0xff] }
 0xa72   :  { %v1395_v32 = vpop.eup %1394 }
 0xa73   :  { %v878_v34 = vmul.f32 %v1395_v32, %v1393_v31  ;;  %v1397_v36 = vpop.eup %1396  ;;  %v877_v42 = vmul.f32 %v1395_v32, %v778_v55  ;;  %v1107_v31 = vld [vmem:[%s1924_s4 + $0x28] sm:$0xff]  ;;  %v1106_v32 = vld [vmem:[%s1924_s4 + $0x20] sm:$0xff] }
 0xa74   :  { %v874_v37 = vadd.f32 1.0, %v1397_v36 }
 0xa75   :  { %880 = vrot.lane.b32.xlu0 %v878_v34, %s1501_s2  ;;  %v1105_v34 = vld [vmem:[%s1924_s4 + $0x18] sm:$0xff] }
 0xa76   :  { %1398 = vrcp.f32 %v874_v37 }
 0xa83   :  { %v1399_v43 = vpop.eup %1398 }
 0xae7   :  { %v881_v60 = vpop.permute.xlu0 %880 }
 0xae8   :  { %v883_v61 = vadd.f32 %v881_v60, %v877_v42  ;;  %v1103_v42 = vld [vmem:[%s1924_s4 + $0x8] sm:$0xff] }
 0xaea   :  { %1400 = vtanh.f32 %v883_v61 }
 0xaf7   :  { %v1401_v62 = vpop.eup %1400 }
 0xaf8   :  { %v885_v63 = vmul.f32 %v1401_v62, %v1399_v43 }
 0xafa   :  { %892 = vrot.lane.b32.xlu1 %v885_v63, %s1501_s2 }
 0xb6c   :  { %v893_v1 = vpop.permute.xlu1 %892 }
 0xb6d   :  { %1245 = vmatmul.mubr.msk.f32.vlgmr.msra.gmra.mxu0 %vm88_vm0, %v893_v1  ;;  %v1251_v1 = vld [vmem:[%s1925_s5] ss:$0 sm:$0xff] }
 0xb6e   :  { %1270 = vmatpush3.msra.mxu0 %v1117_v48  ;;  %1301 = vmatprep.mubr.msk.f32.mxu0 %vm1502_vm1, %v1500_v0 }
 0xb6f   :  { %1271 = vmatprep.subr.mxu0 %v1500_v0 }
 0xb70   :  { %1272 = vmatpush3.msra.mxu0 %v1116_v49 }
 0xb71   :  { %1273 = vmatprep.subr.mxu0 %v1500_v0 }
 0xb72   :  { %1274 = vmatpush3.msra.mxu0 %v1115_v52 }
 0xb73   :  { %1275 = vmatprep.subr.mxu0 %v1500_v0 }
 0xb74   :  { %1276 = vmatpush3.msra.mxu0 %v1114_v58 }
 0xb75   :  { %1277 = vmatprep.subr.mxu0 %v1500_v0 }
 0xb76   :  { %1278 = vmatpush3.msra.mxu0 %v1113_v56 }
 0xb77   :  { %1279 = vmatprep.subr.mxu0 %v1500_v0 }
 0xb78   :  { %1280 = vmatpush3.msra.mxu0 %v1112_v57 }
 0xb79   :  { %1281 = vmatprep.subr.mxu0 %v1500_v0 }
 0xb7a   :  { %1282 = vmatpush3.msra.mxu0 %v1111_v59 }
 0xb7b   :  { %1283 = vmatprep.subr.mxu0 %v1500_v0 }
 0xb7c   :  { %1284 = vmatpush3.msra.mxu0 %v1110_v19 }
 0xb7d   :  { %1285 = vmatprep.subr.mxu0 %v1500_v0 }
 0xb7e   :  { %1286 = vmatpush3.msra.mxu0 %v1109_v29 }
 0xb7f   :  { %1287 = vmatprep.subr.mxu0 %v1500_v0 }
 0xb80   :  { %1288 = vmatpush3.msra.mxu0 %v1108_v30 }
 0xb81   :  { %1289 = vmatprep.subr.mxu0 %v1500_v0 }
 0xb82   :  { %1290 = vmatpush3.msra.mxu0 %v1107_v31 }
 0xb83   :  { %1291 = vmatprep.subr.mxu0 %v1500_v0 }
 0xb84   :  { %1292 = vmatpush3.msra.mxu0 %v1106_v32 }
 0xb85   :  { %1293 = vmatprep.subr.mxu0 %v1500_v0 }
 0xb86   :  { %1294 = vmatpush3.msra.mxu0 %v1105_v34 }
 0xb87   :  { %1295 = vmatprep.subr.mxu0 %v1500_v0 }
 0xb88   :  { %1296 = vmatpush3.msra.mxu0 %v1104_v35 }
 0xb89   :  { %1297 = vmatprep.subr.mxu0 %v1500_v0 }
 0xb8a   :  { %1298 = vmatpush3.msra.mxu0 %v1103_v42 }
 0xb8b   :  { %1299 = vmatprep.subr.mxu0 %v1500_v0 }
 0xc2d   :  { %v962_v3 = vpop.f32.mrf.mxu0 }
 0xc2e   :  { %v967_v4 = vadd.f32 %v962_v3, %v216_v2 }
 0xc2f   :  { %v964_v5 = vpop.f32.mrf.mxu0 }
 0xc30   :  { %v1246_v18 = vmul.f32 -1.442695, %v967_v4  ;;  %v968_v8 = vadd.f32 %v964_v5, %v218_v6 }
 0xc32   :  { %1402 = vpow2.f32 %v1246_v18  ;;  %v1247_v13 = vmul.f32 -1.442695, %v968_v8 }
 0xc33   :  { %1404 = vtanh.f32 %v968_v8 }
 0xc3f   :  { %v1403_v9 = vpop.eup %1402 }
 0xc40   :  { %v972_v10 = vadd.f32 1.0, %v1403_v9  ;;  %v1405_v7 = vpop.eup %1404 }
 0xc42   :  { %1406 = vrcp.f32 %v972_v10 }
 0xc43   :  { %1408 = vpow2.f32 %v1247_v13 }
 0xc4f   :  { %v1407_v11 = vpop.eup %1406 }
 0xc50   :  { %v983_v12 = vmul.f32 %v1407_v11, %v1405_v7  ;;  %v1409_v46 = vpop.eup %1408  ;;  %v982_v15 = vmul.f32 %v1407_v11, %v883_v61  ;;  %v1102_v61 = vld [vmem:[%s1924_s4] sm:$0xff]  ;;  %s1468_s4 = scalar_lea.vmem %s1204_s24, 128 }
 0xc51   :  { %v979_v14 = vadd.f32 1.0, %v1409_v46  ;;  %1300 = vmatpush3.msra.mxu0 %v1102_v61  ;;  %p1469_p10 = scmp.ne.s32.totalorder %s1204_s24, %s1468_s4  ;;  %p1474_p12 = scmp.lt.s32.totalorder %s1468_s4, %s1468_s4 }
 0xc52   :  { %985 = vrot.lane.b32.xlu0 %v983_v12, %s1501_s2 }
 0xc53   :  { %1410 = vrcp.f32 %v979_v14  ;;  %p1475_p13 = por %p1474_p12, %p1473_p11 }
 0xc55   :  { %p1476_p0 = pnand %p1475_p13, %p1469_p10 }
 0xc60   :  { %v1411_v47 = vpop.eup %1410 }
 0xcc4   :  { %v986_v16 = vpop.permute.xlu0 %985 }
 0xcc5   :  { %v988_v17 = vadd.f32 %v986_v16, %v982_v15 }
 0xcc7   :  { %1412 = vtanh.f32 %v988_v17 }
 0xcd4   :  { %v1413_v21 = vpop.eup %1412 }
 0xcd5   :  { %v990_v23 = vmul.f32 %v1413_v21, %v1411_v47 }
 0xcd7   :  { %997 = vrot.lane.b32.xlu1 %v990_v23, %s1501_s2 }
 0xd49   :  { %v998_v28 = vpop.permute.xlu1 %997 }
 0xd4a   :  { %1248 = vmatmul.mubr.msk.f32.vlgmr.msra.gmra.mxu1 %vm88_vm0, %v998_v28 }
 0xe0a   :  { %v1067_v38 = vpop.f32.mrf.mxu1 }
 0xe0b   :  { %v1072_v41 = vadd.f32 %v1067_v38, %v222_v33 }
 0xe0c   :  { %v1069_v45 = vpop.f32.mrf.mxu1 }
 0xe0d   :  { %v1249_v44 = vmul.f32 -1.442695, %v1072_v41  ;;  %v1073_v39 = vadd.f32 %v1069_v45, %v224_v50 }
 0xe0f   :  { %1414 = vpow2.f32 %v1249_v44  ;;  %v1250_v20 = vmul.f32 -1.442695, %v1073_v39 }
 0xe10   :  { %1416 = vtanh.f32 %v1073_v39 }
 0xe1c   :  { %v1415_v51 = vpop.eup %1414 }
 0xe1d   :  { %v1077_v53 = vadd.f32 1.0, %v1415_v51  ;;  %v1417_v54 = vpop.eup %1416 }
 0xe1f   :  { %1418 = vrcp.f32 %v1077_v53 }
 0xe20   :  { %1420 = vpow2.f32 %v1250_v20 }
 0xe2c   :  { %v1419_v55 = vpop.eup %1418 }
 0xe2d   :  { %v1088_v40 = vmul.f32 %v1419_v55, %v1417_v54  ;;  %v1421_v22 = vpop.eup %1420  ;;  %v1087_v25 = vmul.f32 %v1419_v55, %v988_v17 }
 0xe2e   :  { %v1084_v24 = vadd.f32 1.0, %v1421_v22 }
 0xe2f   :  { %1090 = vrot.lane.b32.xlu0 %v1088_v40, %s1501_s2 }
 0xe30   :  { %1422 = vrcp.f32 %v1084_v24 }
 0xe3d   :  { %v1423_v36 = vpop.eup %1422 }
 0xea1   :  { %v1091_v26 = vpop.permute.xlu0 %1090 }
 0xea2   :  { %v1093_v27 = vadd.f32 %v1091_v26, %v1087_v25 }
 0xea4   :  { %1424 = vtanh.f32 %v1093_v27 }
 0xeb1   :  { %v1425_v37 = vpop.eup %1424 }
 0xeb2   :  { %v1095_v60 = vmul.f32 %v1425_v37, %v1423_v36 }
 0xeb4   :  { %1097 = vrot.lane.b32.xlu1 %v1095_v60, %s1501_s2 }
 0xf26   :  { %v1098_v43 = vpop.permute.xlu1 %1097 }
 0xf27   :  { %v1100_v62 = vsel %vm88_vm0, %v1098_v43, %v1093_v27 }
 0xf28   :  { %1426 = vtanh.f32 %v1100_v62 }
 0xf35   :  { %v1427_v63 = vpop.eup %1426 }
 0xf36   :  { %1302 = vmatmul.mubr.f32.vlgmr.msra.gmra.mxu0 %v1427_v63 }
 0xff6   :  { %v1191_v2 = vpop.f32.mrf.mxu0 }
 0xff7   :  { %v1192_v3 = vadd.f32 %v1251_v1, %v1191_v2 }
 0xff8   :  { %v1303_v4 = vpop.f32.mrf.mxu0 }
 0xff9   :  { %1196 = vst.msk [vmem:[#allocation8] sm:$0xff] %vm1195_vm2, %v1192_v3 }
 0xffa   :  { %1479 = shalt.err (!%p1476_p0)
}
 0xffb   :  { %1206 = dma.vmem_to_hbm [thread:$0]  %s1204_s24, 128, %s1926_s6, [#allocation5]  }
 0xffc   :  { %1492 = dma.done.wait [#allocation5], 128  }
 0xffd   :  { %1493 = vsyncadd [#allocation5], 4294967168 }
 0xffe   :  { %1210 = vsyncpa [#allocation4], 1 }
 0xfff   :  { %1211 = vsyncpa [#allocation7], 1 }
0x1000   :  { %1212 = vsyncpa [#allocation5], 1 }

</bundles_post_ra>
